<compile_context>
chip_gen: v6e
topology: v6e:2x2x1
jax: 0.10.0
libtpu: 0.0.40
codegen_flags: <defaults>
</compile_context>

<pallas_src>
import functools
import math

import jax
import jax.numpy as jnp
from jax.experimental import pallas as pl
from jax.experimental.pallas import tpu as pltpu

_GELU_C = math.sqrt(2.0 / math.pi)


# ----------------------------------------------------------------------------
# Kernels
# ----------------------------------------------------------------------------
def _ffn_fused_kernel(x_ref, w1_ref, w2_ref, o_ref, *, ffn):
    """One token tile, weights fully resident.

    h  = x @ W1^T          (tm, 2*ffn)   [gate cols | value cols]
    g  = h[:, :ffn] * NewGELU(h[:, ffn:])
    o  = g @ W2^T          (tm, d_model)
    """
    x = x_ref[...].astype(w1_ref.dtype)          # cast in-kernel (no HBM pass)
    h = jnp.dot(x, w1_ref[...], preferred_element_type=jnp.float32)
    p1 = h[:, :ffn]
    p2 = h[:, ffn:]
    # VampNet NewGELU: 0.5*x*(1 + tanh(sqrt(2/pi)*(x + 0.044715*x^3)))
    inner = _GELU_C * p2 * (1.0 + 0.044715 * (p2 * p2))
    gelu_p2 = 0.5 * p2 * (1.0 + jnp.tanh(inner))
    gated = (p1 * gelu_p2).astype(w2_ref.dtype)  # downcast before 2nd MXU dot
    out = jnp.dot(gated, w2_ref[...], preferred_element_type=jnp.float32)
    o_ref[...] = out.astype(o_ref.dtype)


def _ffn_tiled_kernel(x_ref, w1g_ref, w1v_ref, w2_ref, o_ref, acc_ref):
    """ffn-chunked variant: grid = (token tiles, ffn chunks)."""
    f = pl.program_id(1)

    @pl.when(f == 0)
    def _():
        acc_ref[...] = jnp.zeros_like(acc_ref)

    x = x_ref[...].astype(w1g_ref.dtype)
    p1 = jnp.dot(x, w1g_ref[...], preferred_element_type=jnp.float32)
    p2 = jnp.dot(x, w1v_ref[...], preferred_element_type=jnp.float32)
    inner = _GELU_C * p2 * (1.0 + 0.044715 * (p2 * p2))
    gelu_p2 = 0.5 * p2 * (1.0 + jnp.tanh(inner))
    gated = (p1 * gelu_p2).astype(w2_ref.dtype)
    acc_ref[...] += jnp.dot(gated, w2_ref[...], preferred_element_type=jnp.float32)

    @pl.when(f == pl.num_programs(1) - 1)
    def _():
        o_ref[...] = acc_ref[...].astype(o_ref.dtype)


# ----------------------------------------------------------------------------
# Weight prep (do once at model init, not per call)
# ----------------------------------------------------------------------------
def prepare_weights(w1, w2, compute_dtype=jnp.bfloat16):
    """w1: (4*d_model, d_model) = w_1.weight ; w2: (d_model, 2*d_model) = w_2.weight.

    Returns (w1_cat_t, w2_t):
      w1_cat_t: (d_model, 4*d_model)  -- columns [0:ffn]=gate half, [ffn:]=value half
      w2_t    : (2*d_model, d_model)
    """
    ffn2, d_model = w1.shape
    ffn = ffn2 // 2
    assert w2.shape == (d_model, ffn)
    w1_cat_t = jnp.asarray(w1.T, dtype=compute_dtype)
    w2_t = jnp.asarray(w2.T, dtype=compute_dtype)
    return w1_cat_t, w2_t


# ----------------------------------------------------------------------------
# Helpers
# ----------------------------------------------------------------------------
def _round_up(x, m):
    return ((x + m - 1) // m) * m


def _vmem_capacity_bytes():
    try:
        info = pltpu.get_tpu_info()
        cap = getattr(info, "vmem_capacity_bytes", None)
        if cap:
            return int(cap)
    except Exception:
        pass
    return 64 << 20  # conservative default (v7x per-TensorCore)


def _fused_call(x2d, w1_cat_t, w2_t, *, tm, ffn, out_dtype, vmem_limit,
                single_buffer_weights):
    M, d_model = x2d.shape
    two_ffn = w1_cat_t.shape[1]
    w_kwargs = {}
    if single_buffer_weights:
        # Constant index_map -> block never changes; one buffer is enough.
        w_kwargs = dict(pipeline_mode=pl.Buffered(1))
    return pl.pallas_call(
        functools.partial(_ffn_fused_kernel, ffn=ffn),
        out_shape=jax.ShapeDtypeStruct((M, d_model), out_dtype),
        grid_spec=pltpu.PrefetchScalarGridSpec(
            num_scalar_prefetch=0,
            grid=(pl.cdiv(M, tm),),
            in_specs=[
                pl.BlockSpec((tm, d_model), lambda i: (i, 0)),               # x tile
                pl.BlockSpec((d_model, two_ffn), lambda i: (0, 0), **w_kwargs),  # W1^T
                pl.BlockSpec((ffn, d_model), lambda i: (0, 0), **w_kwargs),      # W2^T
            ],
            out_specs=pl.BlockSpec((tm, d_model), lambda i: (i, 0)),
        ),
        compiler_params=pltpu.CompilerParams(
            dimension_semantics=("parallel",),
            vmem_limit_bytes=vmem_limit,
        ),
    )(x2d, w1_cat_t, w2_t)


def _tiled_call(x2d, w1_cat_t, w2_t, *, tm, tn, ffn, out_dtype, vmem_limit):
    M, d_model = x2d.shape
    n_f = ffn // tn  # number of ffn chunks; value half starts at block n_f
    return pl.pallas_call(
        _ffn_tiled_kernel,
        out_shape=jax.ShapeDtypeStruct((M, d_model), out_dtype),
        grid_spec=pltpu.PrefetchScalarGridSpec(
            num_scalar_prefetch=0,
            grid=(pl.cdiv(M, tm), n_f),
            in_specs=[
                pl.BlockSpec((tm, d_model), lambda i, f: (i, 0)),        # x tile
                pl.BlockSpec((d_model, tn), lambda i, f: (0, f)),        # gate chunk
                pl.BlockSpec((d_model, tn), lambda i, f: (0, f + n_f)),  # value chunk
                pl.BlockSpec((tn, d_model), lambda i, f: (f, 0)),        # W2^T chunk
            ],
            out_specs=pl.BlockSpec((tm, d_model), lambda i, f: (i, 0)),
            scratch_shapes=[pltpu.VMEM((tm, d_model), jnp.float32)],
        ),
        compiler_params=pltpu.CompilerParams(
            dimension_semantics=("parallel", "arbitrary"),
            vmem_limit_bytes=vmem_limit,
        ),
    )(x2d, w1_cat_t, w1_cat_t, w2_t)


# ----------------------------------------------------------------------------
# Public wrapper
# ----------------------------------------------------------------------------
def feedforward_gated_gelu(x, w1_cat_t, w2_t, *, tm=None, ffn_tile=None):
    """x: (B, T, d_model); weights from prepare_weights().

    Matches PyTorch FeedForwardGatedGELU.forward (eval mode).
    """
    B, T, d_model = x.shape
    two_ffn = w1_cat_t.shape[1]
    ffn = two_ffn // 2
    assert w1_cat_t.shape == (d_model, two_ffn)
    assert w2_t.shape == (ffn, d_model)

    out_dtype = x.dtype
    x_b = jnp.dtype(x.dtype).itemsize
    w_b = jnp.dtype(w1_cat_t.dtype).itemsize
    o_b = jnp.dtype(out_dtype).itemsize

    M = B * T
    x2d = x.reshape(M, d_model)

    cap = _vmem_capacity_bytes()
    budget = max(cap - (6 << 20), 16 << 20)   # leave headroom for compiler scratch

    # Token tile: 512 on 128-MiB parts (v5e/v6e), 256 on 64-MiB parts (v7x).
    if tm is None:
        tm = 512 if cap >= (100 << 20) else 256
    tm = max(8, _round_up(tm, 8))
    tm_eff = min(tm, _round_up(M, 8))
    # Ensure >= 2 grid steps so the "parallel" axis can use both v7x TensorCores.
    if pl.cdiv(M, tm_eff) < 2 and M > 8:
        tm_eff = max(8, _round_up(pl.cdiv(M, 2), 8))

    def fused_est(tm_, wfac):
        return (2 * tm_ * d_model * x_b            # x tiles (double-buffered)
                + 2 * tm_ * d_model * o_b          # out tiles (double-buffered)
                + wfac * (d_model * two_ffn + ffn * d_model) * w_b  # weights
                + 3 * tm_ * two_ffn * 4            # f32 intermediates
                + (2 << 20))                       # slack

    def tiled_est(tm_, tn_):
        return (2 * tm_ * d_model * x_b
                + 2 * tm_ * d_model * o_b
                + tm_ * d_model * 4                          # f32 accumulator
                + 2 * (2 * d_model * tn_ + tn_ * d_model) * w_b  # streamed chunks
                + 3 * tm_ * tn_ * 4
                + (2 << 20))

    use_tiled = ffn_tile is not None
    if not use_tiled:
        # Shrink the token tile until the fused plan fits the VMEM budget.
        while fused_est(tm_eff, 1) > budget and tm_eff > 8:
            tm_eff = max(8, _round_up(tm_eff // 2, 8))
        if fused_est(tm_eff, 1) > budget and ffn >= 128 and ffn % 128 == 0:
            use_tiled = True   # weights alone blow the budget -> stream ffn chunks

    if use_tiled:
        if ffn_tile is None:
            tn = 128
            for cand in (2048, 1024, 512, 256, 128):
                if ffn % cand == 0 and tiled_est(tm_eff, cand) <= budget:
                    tn = cand
                    break
        else:
            tn = int(ffn_tile)
        assert ffn % tn == 0, "ffn chunk must divide ffn (partial chunks would pollute the accumulator)"
        assert tn % 128 == 0, "ffn chunk must be lane-aligned (multiple of 128)"
        vmem_limit = min(max(int(tiled_est(tm_eff, tn)), 32 << 20), budget)
        out2d = _tiled_call(x2d, w1_cat_t, w2_t, tm=tm_eff, tn=tn, ffn=ffn,
                            out_dtype=out_dtype, vmem_limit=vmem_limit)
    else:
        vmem_limit = min(max(int(fused_est(tm_eff, 2)), 32 << 20), budget)
        try:
            out2d = _fused_call(x2d, w1_cat_t, w2_t, tm=tm_eff, ffn=ffn,
                                out_dtype=out_dtype, vmem_limit=vmem_limit,
                                single_buffer_weights=True)
        except Exception:
            # Older jax without BlockSpec(pipeline_mode=...): retry with
            # default double-buffered weight blocks.
            out2d = _fused_call(x2d, w1_cat_t, w2_t, tm=tm_eff, ffn=ffn,
                                out_dtype=out_dtype, vmem_limit=vmem_limit,
                                single_buffer_weights=False)

    return out2d.reshape(B, T, d_model)


# ----------------------------------------------------------------------------
# Reference + self-test
# ----------------------------------------------------------------------------
def _reference(x, w1, w2):
    """Plain-JAX f32 reference mirroring the PyTorch forward (eval mode)."""
    h = jnp.einsum("btd,fd->btf", x, w1)
    ff = h.shape[-1] // 2
    p1, p2 = h[..., :ff], h[..., ff:]
    g = 0.5 * p2 * (1.0 + jnp.tanh(_GELU_C * (p2 + 0.044715 * p2 ** 3)))
    return jnp.einsum("btf,df->btd", p1 * g, w2)


if __name__ == "__main__":
    key = jax.random.PRNGKey(0)
    kx, k1, k2, k3, k4, k5 = jax.random.split(key, 6)

    # --- Case A: fused path, small shapes (batch=2, seq=8, d_model=32) -----
    B, T, d_model = 2, 8, 32
    ffn_dim = d_model * 2
    x = jax.random.normal(kx, (B, T, d_model), dtype=jnp.float32)
    w1 = jax.random.normal(k1, (ffn_dim * 2, d_model), dtype=jnp.float32) * 0.02
    w2 = jax.random.normal(k2, (d_model, ffn_dim), dtype=jnp.float32) * 0.02
    ref = _reference(x, w1, w2)

    # 1) Full-precision path: tight check against the reference.
    params_f32 = prepare_weights(w1, w2, compute_dtype=jnp.float32)
    out_f32 = jax.block_until_ready(feedforward_gated_gelu(x, *params_f32))
    assert out_f32.shape == (B, T, d_model)
    assert jnp.allclose(out_f32, ref, atol=1e-5, rtol=1e-5), "f32 fused mismatch"

    # 2) Mixed-precision path (bf16 weights/activations, f32 accumulation).
    params_bf16 = prepare_weights(w1, w2, compute_dtype=jnp.bfloat16)
    out_bf16 = jax.block_until_ready(
        feedforward_gated_gelu(x.astype(jnp.bfloat16), *params_bf16))
    assert out_bf16.shape == (B, T, d_model)
    assert jnp.allclose(out_bf16.astype(jnp.float32), ref,
                        atol=5e-3, rtol=5e-2), "bf16 mismatch"

    # 3) Ragged token count exercises the partial tail block (M = 14, no pad).
    x_rag = x[:, :7, :]
    out_rag = jax.block_until_ready(feedforward_gated_gelu(x_rag, *params_f32))
    assert jnp.allclose(out_rag, ref[:, :7, :], atol=1e-5, rtol=1e-5), \
        "ragged mismatch"

    # --- Case B: ffn-tiled fallback path (d_model=128 -> ffn=256, tn=128) --
    d_model_b = 128
    ffn_b = d_model_b * 2
    xb = jax.random.normal(k3, (B, T, d_model_b), dtype=jnp.float32)
    w1b = jax.random.normal(k4, (ffn_b * 2, d_model_b), dtype=jnp.float32) * 0.02
    w2b = jax.random.normal(k5, (d_model_b, ffn_b), dtype=jnp.float32) * 0.02
    refb = _reference(xb, w1b, w2b)
    params_b = prepare_weights(w1b, w2b, compute_dtype=jnp.float32)
    out_b = jax.block_until_ready(
        feedforward_gated_gelu(xb, *params_b, ffn_tile=128))
    assert out_b.shape == (B, T, d_model_b)
    assert jnp.allclose(out_b, refb, atol=1e-5, rtol=1e-4), "ffn-tiled mismatch"

    print("KERNEL_OK")
</pallas_src>

<mosaic_0001>
module attributes {stable_mosaic.version = 11 : i64} {
  func.func @_ffn_fused_kernel(%arg0: i32, %arg1: memref<8x32xf32, #tpu.memory_space<vmem>>, %arg2: memref<32x128xf32, #tpu.memory_space<vmem>>, %arg3: memref<64x32xf32, #tpu.memory_space<vmem>>, %arg4: memref<8x32xf32, #tpu.memory_space<vmem>>) attributes {dimension_semantics = [#tpu.dimension_semantics<parallel>], iteration_bounds = array<i64: 2>, scalar_prefetch = 0 : i64, scratch_operands = 0 : i64, tpu.core_type = #tpu.core_type<tc>, window_params = [{transform_indices = @transform_0, window_bounds = array<i64: 8, 32>}, {pipeline_mode = #tpu.pipeline_mode<synchronous>, transform_indices = @transform_1, window_bounds = array<i64: 32, 128>}, {pipeline_mode = #tpu.pipeline_mode<synchronous>, transform_indices = @transform_2, window_bounds = array<i64: 64, 32>}, {transform_indices = @transform_3, window_bounds = array<i64: 8, 32>}]} {
    %c0 = arith.constant 0 : index
    %c0_0 = arith.constant 0 : index
    %0 = vector.load %arg1[%c0, %c0_0] : memref<8x32xf32, #tpu.memory_space<vmem>>, vector<8x32xf32>
    %c0_1 = arith.constant 0 : index
    %c0_2 = arith.constant 0 : index
    %1 = vector.load %arg2[%c0_1, %c0_2] : memref<32x128xf32, #tpu.memory_space<vmem>>, vector<32x128xf32>
    %cst = arith.constant dense<0.000000e+00> : vector<8x128xf32>
    %2 = tpu.matmul %0, %1, %cst {dimension_numbers = #tpu.dot_dimension_numbers<[1], [0], [0], [1], [0, 0, 1, 1], [], []>} : vector<8x32xf32>, vector<32x128xf32>, vector<8x128xf32> -> vector<8x128xf32>
    %3 = vector.extract_strided_slice %2 {offsets = [0, 0], sizes = [8, 64], strides = [1, 1]} : vector<8x128xf32> to vector<8x64xf32>
    %4 = vector.extract_strided_slice %2 {offsets = [0, 64], sizes = [8, 64], strides = [1, 1]} : vector<8x128xf32> to vector<8x64xf32>
    %cst_3 = arith.constant 0.797884583 : f32
    %5 = vector.broadcast %cst_3 : f32 to vector<8x64xf32>
    %6 = arith.mulf %5, %4 : vector<8x64xf32>
    %7 = arith.mulf %4, %4 : vector<8x64xf32>
    %cst_4 = arith.constant 4.471500e-02 : f32
    %8 = vector.broadcast %cst_4 : f32 to vector<8x64xf32>
    %9 = arith.mulf %8, %7 : vector<8x64xf32>
    %cst_5 = arith.constant 1.000000e+00 : f32
    %10 = vector.broadcast %cst_5 : f32 to vector<8x64xf32>
    %11 = arith.addf %10, %9 : vector<8x64xf32>
    %12 = arith.mulf %6, %11 : vector<8x64xf32>
    %cst_6 = arith.constant 5.000000e-01 : f32
    %13 = vector.broadcast %cst_6 : f32 to vector<8x64xf32>
    %14 = arith.mulf %13, %4 : vector<8x64xf32>
    %15 = math.tanh %12 : vector<8x64xf32>
    %cst_7 = arith.constant 1.000000e+00 : f32
    %16 = vector.broadcast %cst_7 : f32 to vector<8x64xf32>
    %17 = arith.addf %16, %15 : vector<8x64xf32>
    %18 = arith.mulf %14, %17 : vector<8x64xf32>
    %19 = arith.mulf %3, %18 : vector<8x64xf32>
    %c0_8 = arith.constant 0 : index
    %c0_9 = arith.constant 0 : index
    %20 = vector.load %arg3[%c0_8, %c0_9] : memref<64x32xf32, #tpu.memory_space<vmem>>, vector<64x32xf32>
    %cst_10 = arith.constant dense<0.000000e+00> : vector<8x32xf32>
    %21 = tpu.matmul %19, %20, %cst_10 {dimension_numbers = #tpu.dot_dimension_numbers<[1], [0], [0], [1], [0, 0, 1, 1], [], []>} : vector<8x64xf32>, vector<64x32xf32>, vector<8x32xf32> -> vector<8x32xf32>
    %c0_11 = arith.constant 0 : index
    %c0_12 = arith.constant 0 : index
    %22 = vector.load %arg4[%c0_11, %c0_12] : memref<8x32xf32, #tpu.memory_space<vmem>>, vector<8x32xf32>
    tpu.vector_store %arg4[%c0_11, %c0_12], %21 {strides = array<i32>} : memref<8x32xf32, #tpu.memory_space<vmem>>, vector<8x32xf32>,
    return
  }
  func.func @transform_0(%arg0: i32) -> (i32, i32) {
    %c0_i32 = arith.constant 0 : i32
    %c0_i32_0 = arith.constant 0 : i32
    return %arg0, %c0_i32 : i32, i32
  }
  func.func @transform_1(%arg0: i32) -> (i32, i32) {
    %c0_i32 = arith.constant 0 : i32
    %c0_i32_0 = arith.constant 0 : i32
    %c0_i32_1 = arith.constant 0 : i32
    return %c0_i32, %c0_i32_0 : i32, i32
  }
  func.func @transform_2(%arg0: i32) -> (i32, i32) {
    %c0_i32 = arith.constant 0 : i32
    %c0_i32_0 = arith.constant 0 : i32
    %c0_i32_1 = arith.constant 0 : i32
    return %c0_i32, %c0_i32_0 : i32, i32
  }
  func.func @transform_3(%arg0: i32) -> (i32, i32) {
    %c0_i32 = arith.constant 0 : i32
    %c0_i32_0 = arith.constant 0 : i32
    return %arg0, %c0_i32 : i32, i32
  }
}

module attributes {stable_mosaic.version = 11 : i64} {
  func.func @_ffn_fused_kernel(%arg0: i32, %arg1: memref<8x32xf32, #tpu.memory_space<vmem>>, %arg2: memref<32x128xf32, #tpu.memory_space<vmem>>, %arg3: memref<64x32xf32, #tpu.memory_space<vmem>>, %arg4: memref<8x32xf32, #tpu.memory_space<vmem>>) attributes {dimension_semantics = [#tpu.dimension_semantics<parallel>], iteration_bounds = array<i64: 2>, scalar_prefetch = 0 : i64, scratch_operands = 0 : i64, tpu.core_type = #tpu.core_type<tc>, window_params = [{transform_indices = @transform_0, window_bounds = array<i64: 8, 32>}, {pipeline_mode = #tpu.pipeline_mode<synchronous>, transform_indices = @transform_1, window_bounds = array<i64: 32, 128>}, {pipeline_mode = #tpu.pipeline_mode<synchronous>, transform_indices = @transform_2, window_bounds = array<i64: 64, 32>}, {transform_indices = @transform_3, window_bounds = array<i64: 8, 32>}]} {
    %c0 = arith.constant 0 : index
    %c0_0 = arith.constant 0 : index
    %0 = vector.load %arg1[%c0, %c0_0] : memref<8x32xf32, #tpu.memory_space<vmem>>, vector<8x32xf32>
    %c0_1 = arith.constant 0 : index
    %c0_2 = arith.constant 0 : index
    %1 = vector.load %arg2[%c0_1, %c0_2] : memref<32x128xf32, #tpu.memory_space<vmem>>, vector<32x128xf32>
    %cst = arith.constant dense<0.000000e+00> : vector<8x128xf32>
    %2 = tpu.matmul %0, %1, %cst {dimension_numbers = #tpu.dot_dimension_numbers<[1], [0], [0], [1], [0, 0, 1, 1], [], []>} : vector<8x32xf32>, vector<32x128xf32>, vector<8x128xf32> -> vector<8x128xf32>
    %3 = vector.extract_strided_slice %2 {offsets = [0, 0], sizes = [8, 64], strides = [1, 1]} : vector<8x128xf32> to vector<8x64xf32>
    %4 = vector.extract_strided_slice %2 {offsets = [0, 64], sizes = [8, 64], strides = [1, 1]} : vector<8x128xf32> to vector<8x64xf32>
    %cst_3 = arith.constant 0.797884583 : f32
    %5 = vector.broadcast %cst_3 : f32 to vector<8x64xf32>
    %6 = arith.mulf %5, %4 : vector<8x64xf32>
    %7 = arith.mulf %4, %4 : vector<8x64xf32>
    %cst_4 = arith.constant 4.471500e-02 : f32
    %8 = vector.broadcast %cst_4 : f32 to vector<8x64xf32>
    %9 = arith.mulf %8, %7 : vector<8x64xf32>
    %cst_5 = arith.constant 1.000000e+00 : f32
    %10 = vector.broadcast %cst_5 : f32 to vector<8x64xf32>
    %11 = arith.addf %10, %9 : vector<8x64xf32>
    %12 = arith.mulf %6, %11 : vector<8x64xf32>
    %cst_6 = arith.constant 5.000000e-01 : f32
    %13 = vector.broadcast %cst_6 : f32 to vector<8x64xf32>
    %14 = arith.mulf %13, %4 : vector<8x64xf32>
    %15 = math.tanh %12 : vector<8x64xf32>
    %cst_7 = arith.constant 1.000000e+00 : f32
    %16 = vector.broadcast %cst_7 : f32 to vector<8x64xf32>
    %17 = arith.addf %16, %15 : vector<8x64xf32>
    %18 = arith.mulf %14, %17 : vector<8x64xf32>
    %19 = arith.mulf %3, %18 : vector<8x64xf32>
    %c0_8 = arith.constant 0 : index
    %c0_9 = arith.constant 0 : index
    %20 = vector.load %arg3[%c0_8, %c0_9] : memref<64x32xf32, #tpu.memory_space<vmem>>, vector<64x32xf32>
    %cst_10 = arith.constant dense<0.000000e+00> : vector<8x32xf32>
    %21 = tpu.matmul %19, %20, %cst_10 {dimension_numbers = #tpu.dot_dimension_numbers<[1], [0], [0], [1], [0, 0, 1, 1], [], []>} : vector<8x64xf32>, vector<64x32xf32>, vector<8x32xf32> -> vector<8x32xf32>
    %c0_11 = arith.constant 0 : index
    %c0_12 = arith.constant 0 : index
    %22 = vector.load %arg4[%c0_11, %c0_12] : memref<8x32xf32, #tpu.memory_space<vmem>>, vector<8x32xf32>
    tpu.vector_store %arg4[%c0_11, %c0_12], %21 {strides = array<i32>} : memref<8x32xf32, #tpu.memory_space<vmem>>, vector<8x32xf32>,
    return
  }
  func.func @transform_0(%arg0: i32) -> (i32, i32) {
    %c0_i32 = arith.constant 0 : i32
    %c0_i32_0 = arith.constant 0 : i32
    return %arg0, %c0_i32 : i32, i32
  }
  func.func @transform_1(%arg0: i32) -> (i32, i32) {
    %c0_i32 = arith.constant 0 : i32
    %c0_i32_0 = arith.constant 0 : i32
    %c0_i32_1 = arith.constant 0 : i32
    return %c0_i32, %c0_i32_0 : i32, i32
  }
  func.func @transform_2(%arg0: i32) -> (i32, i32) {
    %c0_i32 = arith.constant 0 : i32
    %c0_i32_0 = arith.constant 0 : i32
    %c0_i32_1 = arith.constant 0 : i32
    return %c0_i32, %c0_i32_0 : i32, i32
  }
  func.func @transform_3(%arg0: i32) -> (i32, i32) {
    %c0_i32 = arith.constant 0 : i32
    %c0_i32_0 = arith.constant 0 : i32
    return %arg0, %c0_i32 : i32, i32
  }
}

</mosaic_0001>

<bundles_post_ra>
// kernel: tpu_custom_call.1
= control target key start
LH: loop header
LB: loop body
LE: loop exit
PB: predicated region body
PF: predicated region fallthrough
CT: control target
= control target key end

     0   :  { %8 = vsyncpa [#allocation3], 0  ;;  %s738_s0 = inlined_call_operand.vmem [shape: f32[16,32], index: 0, kind: input, shape index: {}]   ;;  %s739_s1 = inlined_call_operand.vmem [shape: f32[32,128], index: 1, kind: input, shape index: {}]   ;;  %s740_s2 = inlined_call_operand.vmem [shape: f32[64,32], index: 2, kind: input, shape index: {}]   ;;  %s741_s3 = inlined_call_operand.hbm [shape: f32[16,32], index: 3, kind: output, shape index: {}]  }
   0x1   :  { %10 = vsyncpa [#allocation3 + $0x1], 0  ;;  %s601_s12 = smov 0   ;;  %s603_s13 = smov 0  }
   0x2   :  { %s605_s14 = smov 0   ;;  %s607_s15 = smov 0  }
   0x3 LB: > { %s622_s16 = sadd.s32 4294967295, %s575_s15   ;;  %s415_s17 = sadd.s32 4294967294, %s575_s15   ;;  %s575_s15 = sphi %s607_s15, %s747_s15   ;;  %s571_s14 = sphi %s605_s14, %s746_s14   ;;  %s567_s13 = sphi %s603_s13, %s745_s13   ;;  %s563_s12 = sphi %s601_s12, %s744_s12  }
   0x4   : > { %s626_s18 = sadd.s32 1, %s575_s15   ;;  %s91_s19 = sadd.s32 1, %s571_s14 }
   0x5   : > { %s88_s20 = ssub.s32 %s575_s15, %s626_s18  ;;  %p101_p0 = scmp.ne.s32.totalorder %s571_s14, %s567_s13 }
   0x6   : > { %p89_p1 = scmp.eq.s32.totalorder %s88_s20, 0  ;;  %p102_p2 = scmp.eq.s32.totalorder %s622_s16, 1 }
   0x7   : > { %p107_p3 = scmp.ne.s32.totalorder %s567_s13, %s563_s12  ;;  %p108_p4 = scmp.eq.s32.totalorder %s415_s17, 1 }
   0x8   : > { %s637_s21 = scalar_select %p89_p1, %s571_s14, %s91_s19  }
   0x9   : > { %p639_p5 = por %p102_p2, %p101_p0  ;;  %p643_p6 = por %p108_p4, %p107_p3 }
   0xa   : > { %p418_p7 = scmp.ge.s32.totalorder %s575_s15, 1  ;;  %p139_p8 = scmp.lt.s32.totalorder %s575_s15, 3 }
   0xc   : > { %p140_p9 = pnand %p418_p7, %p139_p8 }
   0xd   : > { %p162_p10 = scmp.lt.s32.totalorder (!%p140_p9), %s622_s16, 1  ;;  %s579_s8 = smov (!%p140_p9), 64  }
   0xe   : > { %143 = sbr.rel (%p140_p9) target bundleno = 571 (0x23b), region = 32  ;;  %s424_s11 = sshll.u32 (!%p140_p9), %s622_s16, 7 }
   0xf   : > { %s696_s25 = scalar_lea.hbm (!%p140_p9), %s741_s3, %s424_s11 }
  0x13   : > { %v170_v0 = vld [vmem:[%s739_s1 + $0x18] sm:$0xff]  ;;  %v577_v1 = vmov 0.0   ;;  %v169_v2 = vld [vmem:[%s739_s1 + $0x10] sm:$0xff]  ;;  %vm578_vm0 = vmmov 0   ;;  %s163_s28 = scalar_select %p162_p10, %s622_s16, 1  ;;  %v168_v3 = vld [vmem:[%s739_s1 + $0x8] sm:$0xff] }
  0x14   : > { %441 = vmatprep.subr.mxu0 %v577_v1  ;;  %449 = vmatprep.mubr.msk.f32.mxu0 %vm578_vm0, %v577_v1  ;;  %v167_v4 = vld [vmem:[%s739_s1] sm:$0xff]  ;;  %vm171_vm1 = vcmask 261120   ;;  %v266_v6 = vld [vmem:[%s740_s2 + $0x38] sm:$0xff]  ;;  %v265_v7 = vld [vmem:[%s740_s2 + $0x30] sm:$0xff]  ;;  %vm267_vm2 = vcmask 523264   ;;  %s580_s16 = smov [#allocation2]  }
  0x15   : > { %442 = vmatpush3.msra.mxu0 %v170_v0  ;;  %452 = vmatprep.subr.mxu1 %v577_v1  ;;  %s420_s4 = sshll.u32 %s163_s28, 3  ;;  %v264_v8 = vld [vmem:[%s740_s2 + $0x28] sm:$0xff]  ;;  %v263_v9 = vld [vmem:[%s740_s2 + $0x20] sm:$0xff]  ;;  %v262_v10 = vld [vmem:[%s740_s2 + $0x18] sm:$0xff]  ;;  %s519_s28 = sshll.u32 %s580_s16, 4  ;;  %s520_s28 = int_to_ptr.vmem [resolvable:$false] %s519_s28 }
  0x16   : > { %443 = vmatprep.subr.mxu0 %v577_v1  ;;  %468 = vmatprep.mubr.msk.f32.mxu1 %vm578_vm0, %v577_v1  ;;  %s165_s9 = scalar_lea.vmem %s738_s0, %s420_s4  ;;  %v261_v11 = vld [vmem:[%s740_s2 + $0x10] sm:$0xff]  ;;  %v260_v19 = vld [vmem:[%s740_s2 + $0x8] sm:$0xff]  ;;  %v259_v20 = vld [vmem:[%s740_s2] sm:$0xff]  ;;  %s521_s29 = scalar_lea.vmem %s520_s28, 256 }
  0x17   : > { %444 = vmatpush3.msra.mxu0 %v169_v2  ;;  %v166_v5 = vld [vmem:[%s165_s9] sm:$0xff]  ;;  %453 = vmatpush3.msra.mxu1 %v266_v6  ;;  %s159_s9 = sand.u32 1, %s567_s13  }
  0x18   : > { %445 = vmatprep.subr.mxu0 %v577_v1  ;;  %454 = vmatprep.subr.mxu1 %v577_v1  ;;  %s419_s10 = sshll.u32 %s159_s9, 3  ;;  %s343_s26 = scalar_lea.sflag [#allocation3], %s159_s9 }
  0x19   : > { %446 = vmatpush3.msra.mxu0 %v168_v3  ;;  %455 = vmatpush3.msra.mxu1 %v265_v7  ;;  %s161_s17 = scalar_lea.vmem [#allocation2], %s419_s10 }
  0x1a   : > { %447 = vmatprep.subr.mxu0 %v577_v1  ;;  %456 = vmatprep.subr.mxu1 %v577_v1  ;;  %s356_s19 = sshll.u32 %s161_s17, 4  ;;  %s698_s19 = int_to_ptr.vmem [resolvable:$true] %s356_s19 }
  0x1b   : > { %448 = vmatpush3.msra.mxu0 %v167_v4  ;;  %457 = vmatpush3.msra.mxu1 %v264_v8  ;;  %s515_s27 = scalar_lea.vmem %s698_s19, 128  ;;  %p522_p0 = scmp.lt.s32.totalorder %s698_s19, %s520_s28 }
  0x1c   : > { %450 = vmatmul.mubr.msk.f32.vlgmr.msra.gmra.mxu0 %vm171_vm1, %v166_v5  ;;  %458 = vmatprep.subr.mxu1 %v577_v1  ;;  %p516_p11 = scmp.ne.s32.totalorder %s698_s19, %s515_s27  ;;  %p523_p1 = scmp.lt.s32.totalorder %s521_s29, %s515_s27 }
  0x1d   : > { %459 = vmatpush3.msra.mxu1 %v263_v9 }
  0x1e   : > { %460 = vmatprep.subr.mxu1 %v577_v1  ;;  %p517_p12 = pnand %p516_p11, %p639_p5  ;;  %p524_p2 = por %p523_p1, %p522_p0 }
  0x1f   : > { %461 = vmatpush3.msra.mxu1 %v262_v10 }
  0x20   : > { %462 = vmatprep.subr.mxu1 %v577_v1  ;;  %p518_p13 = pneg %p517_p12 }
  0x21   : > { %463 = vmatpush3.msra.mxu1 %v261_v11 }
  0x22   : > { %464 = vmatprep.subr.mxu1 %v577_v1  ;;  %p525_p3 = pnand %p524_p2, %p518_p13 }
  0x23   : > { %465 = vmatpush3.msra.mxu1 %v260_v19 }
  0x24   : > { %466 = vmatprep.subr.mxu1 %v577_v1 }
  0x25   : > { %467 = vmatpush3.msra.mxu1 %v259_v20 }
  0xdc   : > { %v241_v12 = vpop.f32.mrf.mxu0 }
  0xdd   : > { %v246_v13 = vmul.f32 %v241_v12, %v241_v12  ;;  %v245_v16 = vmul.f32 0.7978846, %v241_v12  ;;  %v250_v22 = vmul.f32 0.5, %v241_v12 }
  0xde   : > { %v451_v14 = vpop.f32.mrf.mxu0 }
  0xdf   : > { %v247_v15 = vmul.f32 0.044715, %v246_v13 }
  0xe1   : > { %v248_v17 = vadd.f32 1.0, %v247_v15 }
  0xe3   : > { %v249_v18 = vmul.f32 %v248_v17, %v245_v16 }
  0xe5   : > { %513 = vtanh.f32 %v249_v18 }
  0xf2   : > { %v514_v21 = vpop.eup %513 }
  0xf3   : > { %v252_v23 = vadd.f32 1.0, %v514_v21 }
  0xf5   : > { %v253_v24 = vmul.f32 %v252_v23, %v250_v22 }
  0xf7   : > { %255 = vrot.lane.b32.xlu0 %v253_v24, %s579_s8 }
 0x169   : > { %v256_v25 = vpop.permute.xlu0 %255 }
 0x16a   : > { %v258_v26 = vmul.f32 %v256_v25, %v241_v12 }
 0x16c   : > { %469 = vmatmul.mubr.msk.f32.vlgmr.msra.gmra.mxu1 %vm267_vm2, %v258_v26 }
 0x22c   : > { %v337_v27 = vpop.f32.mrf.mxu1 }
 0x22d   : > { %341 = vst.msk [vmem:[%s161_s17] sm:$0xff] %vm171_vm1, %v337_v27 }
 0x22e   : > { %v470_v28 = vpop.f32.mrf.mxu1 }
 0x22f   : > { %528 = shalt.err (!%p525_p3)
}
 0x230   : > { %s529_s30 = scalar_lea.hbm %s696_s25, 128  ;;  %s533_s6 = scalar_lea.hbm %s741_s3, 256 }
 0x231   : > { %p530_p4 = scmp.ne.s32.totalorder %s696_s25, %s529_s30  ;;  %p534_p9 = scmp.lt.s32.totalorder %s696_s25, %s741_s3 }
 0x232   : > { %p535_p10 = scmp.lt.s32.totalorder %s533_s6, %s529_s30 }
 0x233   : > { %p531_p7 = pnand %p530_p4, %p639_p5 }
 0x234   : > { %p536_p11 = por %p535_p10, %p534_p9 }
 0x235   : > { %p532_p8 = pneg %p531_p7 }
 0x237   : > { %p537_p12 = pnand %p536_p11, %p532_p8 }
 0x239   : > { %540 = shalt.err (!%p537_p12)
}
 0x23a   : > { %471 = dma.vmem_to_hbm [thread:$0]  (%p639_p5), %s698_s19, 128, %s696_s25, %s343_s26  }
 0x23b PF: > { %p477_p13 = scmp.ge.s32.totalorder %s575_s15, 2  ;;  %s368_s9 = sand.u32 1, %s563_s12  }
 0x23c   : > { %s369_s10 = scalar_lea.sflag [#allocation3], %s368_s9 }
 0x23d   : > { %p474_p0 = pnand %p477_p13, %p643_p6 }
 0x23f   : > { %p475_p1 = pneg %p474_p0 }
 0x241   : > { %558 = dma.done.wait (%p475_p1), %s369_s10, 128  }
 0x242   : > { %560 = vsyncadd (%p475_p1), %s369_s10, 4294967168  ;;  %p13_p2 = scmp.ge.s32.totalorder %s626_s18, 4   ;;  %s744_s12 = smov %s567_s13 }
 0x243   : > { %s745_s13 = smov %s571_s14  ;;  %s746_s14 = smov %s637_s21 }
 0x244   : > { %s747_s15 = smov %s626_s18  ;;  %15 = sbr.rel (!%p13_p2) target bundleno = 3 (0x3), region = 67 }
 0x249   :  { %374 = vsyncpa [#allocation3], 1 }
 0x24a   :  { %376 = vsyncpa [#allocation3 + $0x1], 1 }

// kernel: tpu_custom_call.1
= control target key start
LH: loop header
LB: loop body
LE: loop exit
PB: predicated region body
PF: predicated region fallthrough
CT: control target
= control target key end

     0   :  { %8 = vsyncpa [#allocation3], 0  ;;  %s738_s0 = inlined_call_operand.vmem [shape: f32[16,32], index: 0, kind: input, shape index: {}]   ;;  %s739_s1 = inlined_call_operand.vmem [shape: f32[32,128], index: 1, kind: input, shape index: {}]   ;;  %s740_s2 = inlined_call_operand.vmem [shape: f32[64,32], index: 2, kind: input, shape index: {}]   ;;  %s741_s3 = inlined_call_operand.hbm [shape: f32[16,32], index: 3, kind: output, shape index: {}]  }
   0x1   :  { %10 = vsyncpa [#allocation3 + $0x1], 0  ;;  %s601_s12 = smov 0   ;;  %s603_s13 = smov 0  }
   0x2   :  { %s605_s14 = smov 0   ;;  %s607_s15 = smov 0  }
   0x3 LB: > { %s622_s16 = sadd.s32 4294967295, %s575_s15   ;;  %s415_s17 = sadd.s32 4294967294, %s575_s15   ;;  %s575_s15 = sphi %s607_s15, %s747_s15   ;;  %s571_s14 = sphi %s605_s14, %s746_s14   ;;  %s567_s13 = sphi %s603_s13, %s745_s13   ;;  %s563_s12 = sphi %s601_s12, %s744_s12  }
   0x4   : > { %s626_s18 = sadd.s32 1, %s575_s15   ;;  %s91_s19 = sadd.s32 1, %s571_s14 }
   0x5   : > { %s88_s20 = ssub.s32 %s575_s15, %s626_s18  ;;  %p101_p0 = scmp.ne.s32.totalorder %s571_s14, %s567_s13 }
   0x6   : > { %p89_p1 = scmp.eq.s32.totalorder %s88_s20, 0  ;;  %p102_p2 = scmp.eq.s32.totalorder %s622_s16, 1 }
   0x7   : > { %p107_p3 = scmp.ne.s32.totalorder %s567_s13, %s563_s12  ;;  %p108_p4 = scmp.eq.s32.totalorder %s415_s17, 1 }
   0x8   : > { %s637_s21 = scalar_select %p89_p1, %s571_s14, %s91_s19  }
   0x9   : > { %p639_p5 = por %p102_p2, %p101_p0  ;;  %p643_p6 = por %p108_p4, %p107_p3 }
   0xa   : > { %p418_p7 = scmp.ge.s32.totalorder %s575_s15, 1  ;;  %p139_p8 = scmp.lt.s32.totalorder %s575_s15, 3 }
   0xc   : > { %p140_p9 = pnand %p418_p7, %p139_p8 }
   0xd   : > { %p162_p10 = scmp.lt.s32.totalorder (!%p140_p9), %s622_s16, 1  ;;  %s579_s8 = smov (!%p140_p9), 64  }
   0xe   : > { %143 = sbr.rel (%p140_p9) target bundleno = 571 (0x23b), region = 32  ;;  %s424_s11 = sshll.u32 (!%p140_p9), %s622_s16, 7 }
   0xf   : > { %s696_s25 = scalar_lea.hbm (!%p140_p9), %s741_s3, %s424_s11 }
  0x13   : > { %v170_v0 = vld [vmem:[%s739_s1 + $0x18] sm:$0xff]  ;;  %v577_v1 = vmov 0.0   ;;  %v169_v2 = vld [vmem:[%s739_s1 + $0x10] sm:$0xff]  ;;  %vm578_vm0 = vmmov 0   ;;  %s163_s28 = scalar_select %p162_p10, %s622_s16, 1  ;;  %v168_v3 = vld [vmem:[%s739_s1 + $0x8] sm:$0xff] }
  0x14   : > { %441 = vmatprep.subr.mxu0 %v577_v1  ;;  %449 = vmatprep.mubr.msk.f32.mxu0 %vm578_vm0, %v577_v1  ;;  %v167_v4 = vld [vmem:[%s739_s1] sm:$0xff]  ;;  %vm171_vm1 = vcmask 261120   ;;  %v266_v6 = vld [vmem:[%s740_s2 + $0x38] sm:$0xff]  ;;  %v265_v7 = vld [vmem:[%s740_s2 + $0x30] sm:$0xff]  ;;  %vm267_vm2 = vcmask 523264   ;;  %s580_s16 = smov [#allocation2]  }
  0x15   : > { %442 = vmatpush3.msra.mxu0 %v170_v0  ;;  %452 = vmatprep.subr.mxu1 %v577_v1  ;;  %s420_s4 = sshll.u32 %s163_s28, 3  ;;  %v264_v8 = vld [vmem:[%s740_s2 + $0x28] sm:$0xff]  ;;  %v263_v9 = vld [vmem:[%s740_s2 + $0x20] sm:$0xff]  ;;  %v262_v10 = vld [vmem:[%s740_s2 + $0x18] sm:$0xff]  ;;  %s519_s28 = sshll.u32 %s580_s16, 4  ;;  %s520_s28 = int_to_ptr.vmem [resolvable:$false] %s519_s28 }
  0x16   : > { %443 = vmatprep.subr.mxu0 %v577_v1  ;;  %468 = vmatprep.mubr.msk.f32.mxu1 %vm578_vm0, %v577_v1  ;;  %s165_s9 = scalar_lea.vmem %s738_s0, %s420_s4  ;;  %v261_v11 = vld [vmem:[%s740_s2 + $0x10] sm:$0xff]  ;;  %v260_v19 = vld [vmem:[%s740_s2 + $0x8] sm:$0xff]  ;;  %v259_v20 = vld [vmem:[%s740_s2] sm:$0xff]  ;;  %s521_s29 = scalar_lea.vmem %s520_s28, 256 }
  0x17   : > { %444 = vmatpush3.msra.mxu0 %v169_v2  ;;  %v166_v5 = vld [vmem:[%s165_s9] sm:$0xff]  ;;  %453 = vmatpush3.msra.mxu1 %v266_v6  ;;  %s159_s9 = sand.u32 1, %s567_s13  }
  0x18   : > { %445 = vmatprep.subr.mxu0 %v577_v1  ;;  %454 = vmatprep.subr.mxu1 %v577_v1  ;;  %s419_s10 = sshll.u32 %s159_s9, 3  ;;  %s343_s26 = scalar_lea.sflag [#allocation3], %s159_s9 }
  0x19   : > { %446 = vmatpush3.msra.mxu0 %v168_v3  ;;  %455 = vmatpush3.msra.mxu1 %v265_v7  ;;  %s161_s17 = scalar_lea.vmem [#allocation2], %s419_s10 }
  0x1a   : > { %447 = vmatprep.subr.mxu0 %v577_v1  ;;  %456 = vmatprep.subr.mxu1 %v577_v1  ;;  %s356_s19 = sshll.u32 %s161_s17, 4  ;;  %s698_s19 = int_to_ptr.vmem [resolvable:$true] %s356_s19 }
  0x1b   : > { %448 = vmatpush3.msra.mxu0 %v167_v4  ;;  %457 = vmatpush3.msra.mxu1 %v264_v8  ;;  %s515_s27 = scalar_lea.vmem %s698_s19, 128  ;;  %p522_p0 = scmp.lt.s32.totalorder %s698_s19, %s520_s28 }
  0x1c   : > { %450 = vmatmul.mubr.msk.f32.vlgmr.msra.gmra.mxu0 %vm171_vm1, %v166_v5  ;;  %458 = vmatprep.subr.mxu1 %v577_v1  ;;  %p516_p11 = scmp.ne.s32.totalorder %s698_s19, %s515_s27  ;;  %p523_p1 = scmp.lt.s32.totalorder %s521_s29, %s515_s27 }
  0x1d   : > { %459 = vmatpush3.msra.mxu1 %v263_v9 }
  0x1e   : > { %460 = vmatprep.subr.mxu1 %v577_v1  ;;  %p517_p12 = pnand %p516_p11, %p639_p5  ;;  %p524_p2 = por %p523_p1, %p522_p0 }
  0x1f   : > { %461 = vmatpush3.msra.mxu1 %v262_v10 }
  0x20   : > { %462 = vmatprep.subr.mxu1 %v577_v1  ;;  %p518_p13 = pneg %p517_p12 }
  0x21   : > { %463 = vmatpush3.msra.mxu1 %v261_v11 }
  0x22   : > { %464 = vmatprep.subr.mxu1 %v577_v1  ;;  %p525_p3 = pnand %p524_p2, %p518_p13 }
  0x23   : > { %465 = vmatpush3.msra.mxu1 %v260_v19 }
  0x24   : > { %466 = vmatprep.subr.mxu1 %v577_v1 }
  0x25   : > { %467 = vmatpush3.msra.mxu1 %v259_v20 }
  0xdc   : > { %v241_v12 = vpop.f32.mrf.mxu0 }
  0xdd   : > { %v246_v13 = vmul.f32 %v241_v12, %v241_v12  ;;  %v245_v16 = vmul.f32 0.7978846, %v241_v12  ;;  %v250_v22 = vmul.f32 0.5, %v241_v12 }
  0xde   : > { %v451_v14 = vpop.f32.mrf.mxu0 }
  0xdf   : > { %v247_v15 = vmul.f32 0.044715, %v246_v13 }
  0xe1   : > { %v248_v17 = vadd.f32 1.0, %v247_v15 }
  0xe3   : > { %v249_v18 = vmul.f32 %v248_v17, %v245_v16 }
  0xe5   : > { %513 = vtanh.f32 %v249_v18 }
  0xf2   : > { %v514_v21 = vpop.eup %513 }
  0xf3   : > { %v252_v23 = vadd.f32 1.0, %v514_v21 }
  0xf5   : > { %v253_v24 = vmul.f32 %v252_v23, %v250_v22 }
  0xf7   : > { %255 = vrot.lane.b32.xlu0 %v253_v24, %s579_s8 }
 0x169   : > { %v256_v25 = vpop.permute.xlu0 %255 }
 0x16a   : > { %v258_v26 = vmul.f32 %v256_v25, %v241_v12 }
 0x16c   : > { %469 = vmatmul.mubr.msk.f32.vlgmr.msra.gmra.mxu1 %vm267_vm2, %v258_v26 }
 0x22c   : > { %v337_v27 = vpop.f32.mrf.mxu1 }
 0x22d   : > { %341 = vst.msk [vmem:[%s161_s17] sm:$0xff] %vm171_vm1, %v337_v27 }
 0x22e   : > { %v470_v28 = vpop.f32.mrf.mxu1 }
 0x22f   : > { %528 = shalt.err (!%p525_p3)
}
 0x230   : > { %s529_s30 = scalar_lea.hbm %s696_s25, 128  ;;  %s533_s6 = scalar_lea.hbm %s741_s3, 256 }
 0x231   : > { %p530_p4 = scmp.ne.s32.totalorder %s696_s25, %s529_s30  ;;  %p534_p9 = scmp.lt.s32.totalorder %s696_s25, %s741_s3 }
 0x232   : > { %p535_p10 = scmp.lt.s32.totalorder %s533_s6, %s529_s30 }
 0x233   : > { %p531_p7 = pnand %p530_p4, %p639_p5 }
 0x234   : > { %p536_p11 = por %p535_p10, %p534_p9 }
 0x235   : > { %p532_p8 = pneg %p531_p7 }
 0x237   : > { %p537_p12 = pnand %p536_p11, %p532_p8 }
 0x239   : > { %540 = shalt.err (!%p537_p12)
}
 0x23a   : > { %471 = dma.vmem_to_hbm [thread:$0]  (%p639_p5), %s698_s19, 128, %s696_s25, %s343_s26  }
 0x23b PF: > { %p477_p13 = scmp.ge.s32.totalorder %s575_s15, 2  ;;  %s368_s9 = sand.u32 1, %s563_s12  }
 0x23c   : > { %s369_s10 = scalar_lea.sflag [#allocation3], %s368_s9 }
 0x23d   : > { %p474_p0 = pnand %p477_p13, %p643_p6 }
 0x23f   : > { %p475_p1 = pneg %p474_p0 }
 0x241   : > { %558 = dma.done.wait (%p475_p1), %s369_s10, 128  }
 0x242   : > { %560 = vsyncadd (%p475_p1), %s369_s10, 4294967168  ;;  %p13_p2 = scmp.ge.s32.totalorder %s626_s18, 4   ;;  %s744_s12 = smov %s567_s13 }
 0x243   : > { %s745_s13 = smov %s571_s14  ;;  %s746_s14 = smov %s637_s21 }
 0x244   : > { %s747_s15 = smov %s626_s18  ;;  %15 = sbr.rel (!%p13_p2) target bundleno = 3 (0x3), region = 67 }
 0x249   :  { %374 = vsyncpa [#allocation3], 1 }
 0x24a   :  { %376 = vsyncpa [#allocation3 + $0x1], 1 }

</bundles_post_ra>
